<compile_context>
chip_gen: v6e
topology: v6e:2x2x1
jax: 0.10.0
libtpu: 0.0.40
codegen_flags: <defaults>
</compile_context>

<pallas_src>
import jax
import jax.numpy as jnp
from jax.experimental import pallas as pl
from jax.experimental.pallas import tpu as pltpu


def _llama_hidden_dim(hidden_dim: int, multiple_of: int, ffn_dim_multiplier):
    hidden_dim = int(2 * hidden_dim / 3)
    if ffn_dim_multiplier is not None:
        hidden_dim = int(ffn_dim_multiplier * hidden_dim)
    return multiple_of * ((hidden_dim + multiple_of - 1) // multiple_of)


def _round_up(x: int, m: int) -> int:
    return ((x + m - 1) // m) * m


def _pick_tiles(dim: int, hidden: int, itemsize: int):
    """Per-generation (tm_target, tn, vmem_limit_bytes)."""
    try:
        kind = jax.devices()[0].device_kind.lower()
    except Exception:
        kind = ""
    if "v5" in kind:          # 4x128^2 MXU, 128 MiB VMEM (16 MiB scoped default)
        tm_t, tn_t, vmem_cap = 128, 512, 64 << 20
    elif "v6" in kind:        # 2x256^2 MXU, 128 MiB VMEM
        tm_t, tn_t, vmem_cap = 256, 1024, 100 << 20
    else:                     # v7x (64 MiB VMEM/TC) and unknown: stay conservative
        tm_t, tn_t, vmem_cap = 256, 512, 48 << 20

    # Largest hidden tile <= target that divides hidden (multiple of 128 lanes).
    if hidden % 128 == 0:
        tn = max(128, (min(tn_t, hidden) // 128) * 128)
        while hidden % tn != 0:
            tn -= 128
    else:
        tn = hidden

    def vmem_bytes(tm, tn_):
        x_t = tm * dim * itemsize
        w13 = dim * 2 * tn_ * itemsize
        w2_ = tn_ * dim * itemsize
        out = tm * dim * itemsize
        acc = tm * dim * 4
        return 2 * (x_t + w13 + w2_ + out) + acc      # double-buffered I/O + acc

    while tn > 128 and hidden % (tn // 2) == 0 and vmem_bytes(tm_t, tn) > vmem_cap:
        tn //= 2

    return tm_t, tn, vmem_cap


def prepare_ffn_weights(w1, w2, w3, *, tn: int, dtype=None):
    """One-time (model-load) weight prep.

    w1/w3: (hidden, dim) and w2: (dim, hidden) in PyTorch Linear layout.
    Returns:
      w13: (dim, 2*hidden) with per-hidden-tile layout [W1^T tile | W3^T tile],
      w2t: (hidden, dim).
    Optionally casts both to `dtype` (e.g. bf16 to halve HBM weight traffic).
    """
    hidden, dim = w1.shape
    assert hidden % tn == 0, "tn must divide hidden"
    n_h = hidden // tn
    w1t = w1.T.reshape(dim, n_h, tn)
    w3t = w3.T.reshape(dim, n_h, tn)
    w13 = jnp.stack([w1t, w3t], axis=2).reshape(dim, 2 * hidden)
    w2t = w2.T
    if dtype is not None:
        w13, w2t = w13.astype(dtype), w2t.astype(dtype)
    return w13, w2t


def _ffn_kernel(x_ref, w13_ref, w2_ref, o_ref, acc_ref):
    # x_ref: (tm, dim)   w13_ref: (dim, 2*tn)   w2_ref: (tn, dim)
    # o_ref: (tm, dim)   acc_ref: (tm, dim) f32, resident across hidden tiles
    h = pl.program_id(1)

    @pl.when(h == 0)
    def _():
        acc_ref[...] = jnp.zeros_like(acc_ref)

    tn = w2_ref.shape[0]
    x = x_ref[...]
    # Single wide MXU pass: [gate | up] for this hidden tile.
    gu = jnp.dot(x, w13_ref[...], preferred_element_type=jnp.float32)   # (tm, 2*tn)
    h1 = gu[:, :tn]
    h3 = gu[:, tn:]
    g = (h1 * jax.lax.logistic(h1)) * h3          # SiLU(gate) * up, in f32 (VPU+EUP)
    # Down-proj input precision follows the weight dtype (bf16 in production).
    acc_ref[...] += jnp.dot(g.astype(w2_ref.dtype), w2_ref[...],
                            preferred_element_type=jnp.float32)

    @pl.when(h == pl.num_programs(1) - 1)
    def _():
        o_ref[...] = acc_ref[...].astype(o_ref.dtype)


def feed_forward_llama(x, w13, w2t, *, tm=None, tn=None, vmem_limit_bytes=None):
    """out = (silu(x @ W1^T) * (x @ W3^T)) @ W2^T.

    `w13`, `w2t` must come from prepare_ffn_weights (built with the same `tn`).
    x: (..., dim); returns same shape/dtype as x.
    """
    orig_shape = x.shape
    dim = orig_shape[-1]
    hidden = w2t.shape[0]
    assert w13.shape == (dim, 2 * hidden)

    itemsize = jnp.dtype(w13.dtype).itemsize
    if tm is None or tn is None or vmem_limit_bytes is None:
        tm_d, tn_d, cap_d = _pick_tiles(dim, hidden, itemsize)
        tm = tm_d if tm is None else tm
        tn = tn_d if tn is None else tn
        vmem_limit_bytes = cap_d if vmem_limit_bytes is None else vmem_limit_bytes
    assert hidden % tn == 0

    x2d = x.reshape(-1, dim)
    if x2d.dtype != w13.dtype:
        x2d = x2d.astype(w13.dtype)
    M = x2d.shape[0]
    tm = min(tm, _round_up(M, 8))
    M_pad = _round_up(M, tm)
    if M_pad != M:
        x2d = jnp.pad(x2d, ((0, M_pad - M), (0, 0)))

    n_m = M_pad // tm
    n_h = hidden // tn
    out_dtype = x.dtype

    cost = pl.CostEstimate(
        flops=6 * M_pad * dim * hidden,
        transcendentals=M_pad * hidden,
        bytes_accessed=(x2d.size + w13.size + w2t.size) * itemsize
                       + M_pad * dim * jnp.dtype(out_dtype).itemsize,
    )

    out = pl.pallas_call(
        _ffn_kernel,
        out_shape=jax.ShapeDtypeStruct((M_pad, dim), out_dtype),
        grid_spec=pltpu.PrefetchScalarGridSpec(
            num_scalar_prefetch=0,
            grid=(n_m, n_h),                                   # reduction axis last
            in_specs=[
                pl.BlockSpec((tm, dim), lambda i, h: (i, 0)),        # x: resident over h
                pl.BlockSpec((dim, 2 * tn), lambda i, h: (0, h)),    # fused [W1|W3]^T tile
                pl.BlockSpec((tn, dim), lambda i, h: (h, 0)),        # W2^T tile
            ],
            out_specs=pl.BlockSpec((tm, dim), lambda i, h: (i, 0)),
            scratch_shapes=[pltpu.VMEM((tm, dim), jnp.float32)],
        ),
        compiler_params=pltpu.CompilerParams(
            dimension_semantics=("parallel", "arbitrary"),
            vmem_limit_bytes=int(vmem_limit_bytes),
        ),
        cost_estimate=cost,
    )(x2d, w13, w2t)

    if M_pad != M:
        out = out[:M]
    return out.reshape(orig_shape)


if __name__ == "__main__":
    # Module config: dim=128, hidden_dim=256, multiple_of=128, ffn_dim_multiplier=None
    #   -> int(2*256/3)=170 -> rounded up to 256
    dim = 128
    hidden = _llama_hidden_dim(256, 128, None)   # = 256
    batch, seq = 2, 8

    key = jax.random.PRNGKey(0)
    kx, k1, k2, k3 = jax.random.split(key, 4)
    x = jax.random.normal(kx, (batch, seq, dim), dtype=jnp.float32)
    # PyTorch Linear layout: (out_features, in_features).
    w1 = jax.random.normal(k1, (hidden, dim), dtype=jnp.float32) * 0.02
    w2 = jax.random.normal(k2, (dim, hidden), dtype=jnp.float32) * 0.02
    w3 = jax.random.normal(k3, (hidden, dim), dtype=jnp.float32) * 0.02

    # Pure-JAX reference.
    h1 = x @ w1.T
    ref = (h1 * jax.nn.sigmoid(h1) * (x @ w3.T)) @ w2.T

    # ---- f32 path, auto tile selection -------------------------------------
    _, tn_auto, _ = _pick_tiles(dim, hidden, 4)
    w13, w2t = prepare_ffn_weights(w1, w2, w3, tn=tn_auto)       # one-time prep
    out = jax.block_until_ready(feed_forward_llama(x, w13, w2t, tn=tn_auto))
    assert out.shape == x.shape
    assert jnp.allclose(out, ref, atol=1e-3, rtol=1e-3), \
        float(jnp.max(jnp.abs(out - ref)))

    # ---- f32 path, multiple hidden tiles (accumulator) + padded token count -
    # Take 13 tokens (not a multiple of 8) out of the 16 available to exercise
    # the M-padding path, and tn=128 to exercise the hidden-axis accumulator.
    n_odd = 13
    x_odd = x.reshape(-1, dim)[:n_odd].reshape(1, n_odd, dim)
    ref_odd = ref.reshape(-1, dim)[:n_odd].reshape(1, n_odd, dim)
    w13b, w2tb = prepare_ffn_weights(w1, w2, w3, tn=128)
    out_odd = jax.block_until_ready(feed_forward_llama(x_odd, w13b, w2tb, tn=128))
    assert out_odd.shape == x_odd.shape
    assert jnp.allclose(out_odd, ref_odd, atol=1e-3, rtol=1e-3), \
        float(jnp.max(jnp.abs(out_odd - ref_odd)))

    # ---- bf16 weights + activations (production config) ---------------------
    w13h, w2th = prepare_ffn_weights(w1, w2, w3, tn=tn_auto, dtype=jnp.bfloat16)
    out_bf16 = jax.block_until_ready(
        feed_forward_llama(x.astype(jnp.bfloat16), w13h, w2th, tn=tn_auto))
    assert out_bf16.dtype == jnp.bfloat16
    assert jnp.allclose(out_bf16.astype(jnp.float32), ref, atol=5e-2, rtol=5e-2)

    # TODO(synk): ColumnParallelLinear/RowParallelLinear tensor-parallel sharding
    # (all-reduce of the down-proj output) is not modeled; single-device FFN only.
    print("KERNEL_OK")
</pallas_src>

<mosaic_0001>
module attributes {stable_mosaic.version = 11 : i64} {
  func.func @_ffn_kernel(%arg0: i32, %arg1: i32, %arg2: memref<16x128xf32, #tpu.memory_space<vmem>>, %arg3: memref<128x512xf32, #tpu.memory_space<vmem>>, %arg4: memref<256x128xf32, #tpu.memory_space<vmem>>, %arg5: memref<16x128xf32, #tpu.memory_space<vmem>>, %arg6: memref<16x128xf32, #tpu.memory_space<vmem>>) attributes {dimension_semantics = [#tpu.dimension_semantics<parallel>, #tpu.dimension_semantics<arbitrary>], iteration_bounds = array<i64: 1, 1>, scalar_prefetch = 0 : i64, scratch_operands = 1 : i64, tpu.core_type = #tpu.core_type<tc>, window_params = [{transform_indices = @transform_0, window_bounds = array<i64: 16, 128>}, {transform_indices = @transform_1, window_bounds = array<i64: 128, 512>}, {transform_indices = @transform_2, window_bounds = array<i64: 256, 128>}, {transform_indices = @transform_3, window_bounds = array<i64: 16, 128>}]} {
    %c0_i32 = arith.constant 0 : i32
    %0 = arith.cmpi eq, %arg1, %c0_i32 : i32
    %1 = arith.extui %0 : i1 to i32
    %c0_i32_0 = arith.constant 0 : i32
    %2 = arith.cmpi ne, %1, %c0_i32_0 : i32
    scf.if %2 {
      %cst_14 = arith.constant 0.000000e+00 : f32
      %23 = vector.broadcast %cst_14 : f32 to vector<16x128xf32>
      %c0_15 = arith.constant 0 : index
      %c0_16 = arith.constant 0 : index
      %24 = vector.load %arg6[%c0_15, %c0_16] : memref<16x128xf32, #tpu.memory_space<vmem>>, vector<16x128xf32>
      tpu.vector_store %arg6[%c0_15, %c0_16], %23 {strides = array<i32>} : memref<16x128xf32, #tpu.memory_space<vmem>>, vector<16x128xf32>,
    } else {
    }
    %c0 = arith.constant 0 : index
    %c0_1 = arith.constant 0 : index
    %3 = vector.load %arg2[%c0, %c0_1] : memref<16x128xf32, #tpu.memory_space<vmem>>, vector<16x128xf32>
    %c0_2 = arith.constant 0 : index
    %c0_3 = arith.constant 0 : index
    %4 = vector.load %arg3[%c0_2, %c0_3] : memref<128x512xf32, #tpu.memory_space<vmem>>, vector<128x512xf32>
    %cst = arith.constant dense<0.000000e+00> : vector<16x512xf32>
    %5 = tpu.matmul %3, %4, %cst {dimension_numbers = #tpu.dot_dimension_numbers<[1], [0], [0], [1], [0, 0, 1, 1], [], []>} : vector<16x128xf32>, vector<128x512xf32>, vector<16x512xf32> -> vector<16x512xf32>
    %6 = vector.extract_strided_slice %5 {offsets = [0, 0], sizes = [16, 256], strides = [1, 1]} : vector<16x512xf32> to vector<16x256xf32>
    %7 = vector.extract_strided_slice %5 {offsets = [0, 256], sizes = [16, 256], strides = [1, 1]} : vector<16x512xf32> to vector<16x256xf32>
    %8 = arith.negf %6 : vector<16x256xf32>
    %9 = math.exp %8 : vector<16x256xf32>
    %cst_4 = arith.constant 1.000000e+00 : f32
    %10 = vector.broadcast %cst_4 : f32 to vector<16x256xf32>
    %11 = arith.addf %10, %9 : vector<16x256xf32>
    %12 = arith.divf %10, %11 : vector<16x256xf32>
    %13 = arith.mulf %6, %12 : vector<16x256xf32>
    %14 = arith.mulf %13, %7 : vector<16x256xf32>
    %c0_5 = arith.constant 0 : index
    %c0_6 = arith.constant 0 : index
    %15 = vector.load %arg6[%c0_5, %c0_6] : memref<16x128xf32, #tpu.memory_space<vmem>>, vector<16x128xf32>
    %c0_7 = arith.constant 0 : index
    %c0_8 = arith.constant 0 : index
    %16 = vector.load %arg4[%c0_7, %c0_8] : memref<256x128xf32, #tpu.memory_space<vmem>>, vector<256x128xf32>
    %cst_9 = arith.constant dense<0.000000e+00> : vector<16x128xf32>
    %17 = tpu.matmul %14, %16, %cst_9 {dimension_numbers = #tpu.dot_dimension_numbers<[1], [0], [0], [1], [0, 0, 1, 1], [], []>} : vector<16x256xf32>, vector<256x128xf32>, vector<16x128xf32> -> vector<16x128xf32>
    %18 = arith.addf %15, %17 : vector<16x128xf32>
    %c0_10 = arith.constant 0 : index
    %c0_11 = arith.constant 0 : index
    %19 = vector.load %arg6[%c0_10, %c0_11] : memref<16x128xf32, #tpu.memory_space<vmem>>, vector<16x128xf32>
    tpu.vector_store %arg6[%c0_10, %c0_11], %18 {strides = array<i32>} : memref<16x128xf32, #tpu.memory_space<vmem>>, vector<16x128xf32>,
    %c0_i32_12 = arith.constant 0 : i32
    %20 = arith.cmpi eq, %arg1, %c0_i32_12 : i32
    %21 = arith.extui %20 : i1 to i32
    %c0_i32_13 = arith.constant 0 : i32
    %22 = arith.cmpi ne, %21, %c0_i32_13 : i32
    scf.if %22 {
      %c0_14 = arith.constant 0 : index
      %c0_15 = arith.constant 0 : index
      %23 = vector.load %arg6[%c0_14, %c0_15] : memref<16x128xf32, #tpu.memory_space<vmem>>, vector<16x128xf32>
      %c0_16 = arith.constant 0 : index
      %c0_17 = arith.constant 0 : index
      %24 = vector.load %arg5[%c0_16, %c0_17] : memref<16x128xf32, #tpu.memory_space<vmem>>, vector<16x128xf32>
      tpu.vector_store %arg5[%c0_16, %c0_17], %23 {strides = array<i32>} : memref<16x128xf32, #tpu.memory_space<vmem>>, vector<16x128xf32>,
    } else {
    }
    return
  }
  func.func @transform_0(%arg0: i32, %arg1: i32) -> (i32, i32) {
    %c0_i32 = arith.constant 0 : i32
    %c0_i32_0 = arith.constant 0 : i32
    return %arg0, %c0_i32 : i32, i32
  }
  func.func @transform_1(%arg0: i32, %arg1: i32) -> (i32, i32) {
    %c0_i32 = arith.constant 0 : i32
    %c0_i32_0 = arith.constant 0 : i32
    return %c0_i32, %arg1 : i32, i32
  }
  func.func @transform_2(%arg0: i32, %arg1: i32) -> (i32, i32) {
    %c0_i32 = arith.constant 0 : i32
    %c0_i32_0 = arith.constant 0 : i32
    return %arg1, %c0_i32 : i32, i32
  }
  func.func @transform_3(%arg0: i32, %arg1: i32) -> (i32, i32) {
    %c0_i32 = arith.constant 0 : i32
    %c0_i32_0 = arith.constant 0 : i32
    return %arg0, %c0_i32 : i32, i32
  }
}

</mosaic_0001>

<bundles_post_ra>
// kernel: tpu_custom_call.1
= control target key start
LH: loop header
LB: loop body
LE: loop exit
PB: predicated region body
PF: predicated region fallthrough
CT: control target
= control target key end

     0   :  { %8 = vsyncpa [#allocation4], 0  ;;  %s691_s0 = inlined_call_operand.hbm [shape: f32[16,128], index: 0, kind: input, shape index: {}]   ;;  %s692_s1 = inlined_call_operand.hbm [shape: f32[128,512], index: 1, kind: input, shape index: {}]   ;;  %s693_s2 = inlined_call_operand.hbm [shape: f32[256,128], index: 2, kind: input, shape index: {}]   ;;  %s694_s3 = inlined_call_operand.hbm [shape: f32[16,128], index: 3, kind: output, shape index: {}]  }
   0x1   :  { %9 = vsyncpa [#allocation7], 0 }
   0x2   :  { %10 = vsyncpa [#allocation5], 0  ;;  %s637_s12 = smov [#allocation6]  }
   0x3   :  { %s28_s13 = sshll.u32 %s637_s12, 4  ;;  %s29_s13 = int_to_ptr.vmem [resolvable:$true] %s28_s13 }
   0x4   :  { %s559_s14 = scalar_lea.vmem %s29_s13, 8192  ;;  %p564_p1 = scmp.lt.s32.totalorder %s29_s13, %s29_s13 }
   0x5   :  { %p560_p0 = scmp.ne.s32.totalorder %s29_s13, %s559_s14  ;;  %p565_p2 = scmp.lt.s32.totalorder %s559_s14, %s559_s14 }
   0x7   :  { %p566_p3 = por %p565_p2, %p564_p1 }
   0x9   :  { %p567_p4 = pnand %p566_p3, %p560_p0 }
   0xb   :  { %570 = shalt.err (!%p567_p4)
}
   0xc   :  { %s638_s15 = smov 512   ;;  %s639_s16 = smov 32  }
   0xd   :  { %34 = dma.hbm_to_vmem [thread:$0]  %s692_s1, 8192, %s29_s13, [#allocation7], %s638_s15, %s638_s15, %s639_s16  }
   0xe   :  { %s640_s19 = smov [#allocation3]  }
   0xf   :  { %s16_s20 = sshll.u32 %s640_s19, 4  ;;  %s17_s20 = int_to_ptr.vmem [resolvable:$true] %s16_s20 }
  0x10   :  { %s579_s21 = scalar_lea.vmem %s17_s20, 256  ;;  %p584_p6 = scmp.lt.s32.totalorder %s17_s20, %s17_s20 }
  0x11   :  { %p580_p5 = scmp.ne.s32.totalorder %s17_s20, %s579_s21  ;;  %p585_p7 = scmp.lt.s32.totalorder %s579_s21, %s579_s21 }
  0x13   :  { %p586_p8 = por %p585_p7, %p584_p6 }
  0x15   :  { %p587_p9 = pnand %p586_p8, %p580_p5 }
  0x17   :  { %590 = shalt.err (!%p587_p9)
}
  0x18   :  { %s641_s22 = smov 128   ;;  %s642_s23 = smov 8  }
  0x19   :  { %22 = dma.hbm_to_vmem [thread:$0]  %s691_s0, 256, %s17_s20, [#allocation4], %s641_s22, %s641_s22, %s642_s23  }
  0x1a   :  { %s643_s1 = smov [#allocation8]  }
  0x1b   :  { %s40_s26 = sshll.u32 %s643_s1, 4  ;;  %s41_s26 = int_to_ptr.vmem [resolvable:$true] %s40_s26 }
  0x1c   :  { %s599_s27 = scalar_lea.vmem %s41_s26, 4096  ;;  %p604_p11 = scmp.lt.s32.totalorder %s41_s26, %s41_s26 }
  0x1d   :  { %p600_p10 = scmp.ne.s32.totalorder %s41_s26, %s599_s27  ;;  %p605_p12 = scmp.lt.s32.totalorder %s599_s27, %s599_s27 }
  0x1f   :  { %p606_p13 = por %p605_p12, %p604_p11 }
  0x21   :  { %p607_p0 = pnand %p606_p13, %p600_p10 }
  0x23   :  { %610 = shalt.err (!%p607_p0)
}
  0x24   :  { %46 = dma.hbm_to_vmem [thread:$0]  %s693_s2, 4096, %s41_s26, [#allocation7], %s641_s22, %s641_s22, %s642_s23  }
  0x25   :  { %631 = dma.done.wait [#allocation4], 256  }
  0x26   :  { %632 = vsyncadd [#allocation4], 4294967040 }
  0x27   :  { %633 = dma.done.wait [#allocation7], 12288  }
  0x28   :  { %634 = vsyncadd [#allocation7], 4294955008  ;;  %v644_v0 = vmov 0.0   ;;  %v125_v1 = vld [vmem:[#allocation6 + $0x1e8] sm:$0xff]  ;;  %v124_v2 = vld [vmem:[#allocation6 + $0x1e0] sm:$0xff]  ;;  %s645_s0 = smov [#allocation9]  }
  0x29   :  { %192 = vmatprep.mubr.f32.mxu0 %v644_v0  ;;  %269 = vmatprep.mubr.f32.mxu1 %v644_v0  ;;  %v121_v3 = vld [vmem:[#allocation6 + $0x1c8] sm:$0xff]  ;;  %v120_v4 = vld [vmem:[#allocation6 + $0x1c0] sm:$0xff]  ;;  %v127_v15 = vld [vmem:[#allocation6 + $0x1f8] sm:$0xff]  ;;  %s439_s2 = sshll.u32 %s645_s0, 4  ;;  %s440_s2 = int_to_ptr.vmem [resolvable:$true] %s439_s2 }
  0x2a   :  { %128 = vmatprep.subr.mxu0 %v125_v1  ;;  %v117_v5 = vld [vmem:[#allocation6 + $0x1a8] sm:$0xff]  ;;  %v116_v6 = vld [vmem:[#allocation6 + $0x1a0] sm:$0xff]  ;;  %v126_v16 = vld [vmem:[#allocation6 + $0x1f0] sm:$0xff]  ;;  %205 = vmatprep.subr.mxu1 %v127_v15  ;;  %s611_s30 = scalar_lea.vmem %s440_s2, 256  ;;  %p616_p2 = scmp.lt.s32.totalorder %s440_s2, %s440_s2 }
  0x2b   :  { %129 = vmatpush1.msra.mxu0 %v124_v2  ;;  %v113_v7 = vld [vmem:[#allocation6 + $0x188] sm:$0xff]  ;;  %v112_v8 = vld [vmem:[#allocation6 + $0x180] sm:$0xff]  ;;  %v123_v17 = vld [vmem:[#allocation6 + $0x1d8] sm:$0xff]  ;;  %206 = vmatpush1.msra.mxu1 %v126_v16  ;;  %p612_p1 = scmp.ne.s32.totalorder %s440_s2, %s611_s30  ;;  %p617_p3 = scmp.lt.s32.totalorder %s611_s30, %s611_s30 }
  0x2c   :  { %130 = vmatprep.subr.mxu0 %v121_v3  ;;  %v109_v9 = vld [vmem:[#allocation6 + $0x168] sm:$0xff]  ;;  %v108_v10 = vld [vmem:[#allocation6 + $0x160] sm:$0xff]  ;;  %v122_v19 = vld [vmem:[#allocation6 + $0x1d0] sm:$0xff]  ;;  %207 = vmatprep.subr.mxu1 %v123_v17 }
  0x2d   :  { %131 = vmatpush1.msra.mxu0 %v120_v4  ;;  %v105_v11 = vld [vmem:[#allocation6 + $0x148] sm:$0xff]  ;;  %v104_v12 = vld [vmem:[#allocation6 + $0x140] sm:$0xff]  ;;  %v119_v21 = vld [vmem:[#allocation6 + $0x1b8] sm:$0xff]  ;;  %208 = vmatpush1.msra.mxu1 %v122_v19  ;;  %p618_p4 = por %p617_p3, %p616_p2 }
  0x2e   :  { %132 = vmatprep.subr.mxu0 %v117_v5  ;;  %v101_v13 = vld [vmem:[#allocation6 + $0x128] sm:$0xff]  ;;  %v100_v14 = vld [vmem:[#allocation6 + $0x120] sm:$0xff]  ;;  %v118_v23 = vld [vmem:[#allocation6 + $0x1b0] sm:$0xff]  ;;  %209 = vmatprep.subr.mxu1 %v119_v21 }
  0x2f   :  { %133 = vmatpush1.msra.mxu0 %v116_v6  ;;  %v97_v18 = vld [vmem:[#allocation6 + $0x108] sm:$0xff]  ;;  %v96_v20 = vld [vmem:[#allocation6 + $0x100] sm:$0xff]  ;;  %v115_v25 = vld [vmem:[#allocation6 + $0x198] sm:$0xff]  ;;  %210 = vmatpush1.msra.mxu1 %v118_v23  ;;  %p619_p5 = pnand %p618_p4, %p612_p1 }
  0x30   :  { %134 = vmatprep.subr.mxu0 %v113_v7  ;;  %v93_v22 = vld [vmem:[#allocation6 + $0xe8] sm:$0xff]  ;;  %v92_v24 = vld [vmem:[#allocation6 + $0xe0] sm:$0xff]  ;;  %v114_v27 = vld [vmem:[#allocation6 + $0x190] sm:$0xff]  ;;  %211 = vmatprep.subr.mxu1 %v115_v25 }
  0x31   :  { %135 = vmatpush1.msra.mxu0 %v112_v8  ;;  %v89_v26 = vld [vmem:[#allocation6 + $0xc8] sm:$0xff]  ;;  %v88_v28 = vld [vmem:[#allocation6 + $0xc0] sm:$0xff]  ;;  %v111_v29 = vld [vmem:[#allocation6 + $0x178] sm:$0xff]  ;;  %212 = vmatpush1.msra.mxu1 %v114_v27 }
  0x32   :  { %136 = vmatprep.subr.mxu0 %v109_v9  ;;  %v85_v30 = vld [vmem:[#allocation6 + $0xa8] sm:$0xff]  ;;  %v110_v31 = vld [vmem:[#allocation6 + $0x170] sm:$0xff]  ;;  %v84_v32 = vld [vmem:[#allocation6 + $0xa0] sm:$0xff]  ;;  %213 = vmatprep.subr.mxu1 %v111_v29 }
  0x33   :  { %137 = vmatpush1.msra.mxu0 %v108_v10  ;;  %v107_v33 = vld [vmem:[#allocation6 + $0x158] sm:$0xff]  ;;  %v81_v34 = vld [vmem:[#allocation6 + $0x88] sm:$0xff]  ;;  %v106_v35 = vld [vmem:[#allocation6 + $0x150] sm:$0xff]  ;;  %214 = vmatpush1.msra.mxu1 %v110_v31 }
  0x34   :  { %138 = vmatprep.subr.mxu0 %v105_v11  ;;  %v80_v36 = vld [vmem:[#allocation6 + $0x80] sm:$0xff]  ;;  %v103_v37 = vld [vmem:[#allocation6 + $0x138] sm:$0xff]  ;;  %v77_v38 = vld [vmem:[#allocation6 + $0x68] sm:$0xff]  ;;  %215 = vmatprep.subr.mxu1 %v107_v33 }
  0x35   :  { %139 = vmatpush1.msra.mxu0 %v104_v12  ;;  %v102_v39 = vld [vmem:[#allocation6 + $0x130] sm:$0xff]  ;;  %v76_v40 = vld [vmem:[#allocation6 + $0x60] sm:$0xff]  ;;  %216 = vmatpush1.msra.mxu1 %v106_v35  ;;  %v99_v41 = vld [vmem:[#allocation6 + $0x118] sm:$0xff] }
  0x36   :  { %140 = vmatprep.subr.mxu0 %v101_v13  ;;  %v73_v42 = vld [vmem:[#allocation6 + $0x48] sm:$0xff]  ;;  %217 = vmatprep.subr.mxu1 %v103_v37  ;;  %v98_v43 = vld [vmem:[#allocation6 + $0x110] sm:$0xff]  ;;  %v72_v44 = vld [vmem:[#allocation6 + $0x40] sm:$0xff] }
  0x37   :  { %141 = vmatpush1.msra.mxu0 %v100_v14  ;;  %218 = vmatpush1.msra.mxu1 %v102_v39  ;;  %v95_v45 = vld [vmem:[#allocation6 + $0xf8] sm:$0xff]  ;;  %v69_v46 = vld [vmem:[#allocation6 + $0x28] sm:$0xff]  ;;  %v94_v47 = vld [vmem:[#allocation6 + $0xf0] sm:$0xff] }
  0x38   :  { %142 = vmatprep.subr.mxu0 %v97_v18  ;;  %219 = vmatprep.subr.mxu1 %v99_v41  ;;  %v68_v48 = vld [vmem:[#allocation6 + $0x20] sm:$0xff]  ;;  %v91_v49 = vld [vmem:[#allocation6 + $0xd8] sm:$0xff]  ;;  %v65_v50 = vld [vmem:[#allocation6 + $0x8] sm:$0xff] }
  0x39   :  { %143 = vmatpush1.msra.mxu0 %v96_v20  ;;  %220 = vmatpush1.msra.mxu1 %v98_v43  ;;  %v90_v51 = vld [vmem:[#allocation6 + $0xd0] sm:$0xff]  ;;  %v64_v52 = vld [vmem:[#allocation6] sm:$0xff]  ;;  %v87_v53 = vld [vmem:[#allocation6 + $0xb8] sm:$0xff] }
  0x3a   :  { %144 = vmatprep.subr.mxu0 %v93_v22  ;;  %221 = vmatprep.subr.mxu1 %v95_v45  ;;  %v62_v54 = vld [vmem:[#allocation3] sm:$0xff]  ;;  %v83_v56 = vld [vmem:[#allocation6 + $0x98] sm:$0xff]  ;;  %v345_v8 = vld [vmem:[#allocation8 + $0xe8] sm:$0xff] }
  0x3b   :  { %145 = vmatpush1.msra.mxu0 %v92_v24  ;;  %222 = vmatpush1.msra.mxu1 %v94_v47  ;;  %v86_v55 = vld [vmem:[#allocation6 + $0xb0] sm:$0xff]  ;;  %v79_v58 = vld [vmem:[#allocation6 + $0x78] sm:$0xff]  ;;  %v329_v9 = vld [vmem:[#allocation8 + $0x68] sm:$0xff] }
  0x3c   :  { %146 = vmatprep.subr.mxu0 %v89_v26  ;;  %223 = vmatprep.subr.mxu1 %v91_v49  ;;  %v82_v57 = vld [vmem:[#allocation6 + $0x90] sm:$0xff]  ;;  %v63_v59 = vld [vmem:[#allocation3 + $0x8] sm:$0xff]  ;;  %v344_v10 = vld [vmem:[#allocation8 + $0xe0] sm:$0xff] }
  0x3d   :  { %147 = vmatpush1.msra.mxu0 %v88_v28  ;;  %224 = vmatpush1.msra.mxu1 %v90_v51  ;;  %v78_v60 = vld [vmem:[#allocation6 + $0x70] sm:$0xff]  ;;  %v75_v61 = vld [vmem:[#allocation6 + $0x58] sm:$0xff]  ;;  %v341_v15 = vld [vmem:[#allocation8 + $0xc8] sm:$0xff] }
  0x3e   :  { %148 = vmatprep.subr.mxu0 %v85_v30  ;;  %225 = vmatprep.subr.mxu1 %v87_v53  ;;  %v74_v62 = vld [vmem:[#allocation6 + $0x50] sm:$0xff]  ;;  %v71_v63 = vld [vmem:[#allocation6 + $0x38] sm:$0xff]  ;;  %v325_v16 = vld [vmem:[#allocation8 + $0x48] sm:$0xff] }
  0x3f   :  { %149 = vmatpush1.msra.mxu0 %v84_v32  ;;  %226 = vmatpush1.msra.mxu1 %v86_v55  ;;  %v70_v1 = vld [vmem:[#allocation6 + $0x30] sm:$0xff]  ;;  %v67_v2 = vld [vmem:[#allocation6 + $0x18] sm:$0xff]  ;;  %v340_v17 = vld [vmem:[#allocation8 + $0xc0] sm:$0xff] }
  0x40   :  { %150 = vmatprep.subr.mxu0 %v81_v34  ;;  %227 = vmatprep.subr.mxu1 %v83_v56  ;;  %v66_v3 = vld [vmem:[#allocation6 + $0x10] sm:$0xff]  ;;  %v347_v4 = vld [vmem:[#allocation8 + $0xf8] sm:$0xff]  ;;  %v324_v18 = vld [vmem:[#allocation8 + $0x40] sm:$0xff] }
  0x41   :  { %151 = vmatpush1.msra.mxu0 %v80_v36  ;;  %228 = vmatpush1.msra.mxu1 %v82_v57  ;;  %v331_v5 = vld [vmem:[#allocation8 + $0x78] sm:$0xff]  ;;  %v346_v6 = vld [vmem:[#allocation8 + $0xf0] sm:$0xff]  ;;  %v337_v23 = vld [vmem:[#allocation8 + $0xa8] sm:$0xff] }
  0x42   :  { %152 = vmatprep.subr.mxu0 %v77_v38  ;;  %229 = vmatprep.subr.mxu1 %v79_v58  ;;  %v330_v7 = vld [vmem:[#allocation8 + $0x70] sm:$0xff]  ;;  %v343_v11 = vld [vmem:[#allocation8 + $0xd8] sm:$0xff]  ;;  %v321_v24 = vld [vmem:[#allocation8 + $0x28] sm:$0xff] }
  0x43   :  { %153 = vmatpush1.msra.mxu0 %v76_v40  ;;  %230 = vmatpush1.msra.mxu1 %v78_v60  ;;  %v327_v12 = vld [vmem:[#allocation8 + $0x58] sm:$0xff]  ;;  %v342_v13 = vld [vmem:[#allocation8 + $0xd0] sm:$0xff]  ;;  %v336_v25 = vld [vmem:[#allocation8 + $0xa0] sm:$0xff] }
  0x44   :  { %154 = vmatprep.subr.mxu0 %v73_v42  ;;  %231 = vmatprep.subr.mxu1 %v75_v61  ;;  %v326_v14 = vld [vmem:[#allocation8 + $0x50] sm:$0xff]  ;;  %v339_v19 = vld [vmem:[#allocation8 + $0xb8] sm:$0xff]  ;;  %v320_v26 = vld [vmem:[#allocation8 + $0x20] sm:$0xff] }
  0x45   :  { %155 = vmatpush1.msra.mxu0 %v72_v44  ;;  %232 = vmatpush1.msra.mxu1 %v74_v62  ;;  %v323_v20 = vld [vmem:[#allocation8 + $0x38] sm:$0xff]  ;;  %v338_v21 = vld [vmem:[#allocation8 + $0xb0] sm:$0xff]  ;;  %v333_v31 = vld [vmem:[#allocation8 + $0x88] sm:$0xff] }
  0x46   :  { %156 = vmatprep.subr.mxu0 %v69_v46  ;;  %233 = vmatprep.subr.mxu1 %v71_v63  ;;  %v322_v22 = vld [vmem:[#allocation8 + $0x30] sm:$0xff]  ;;  %v335_v27 = vld [vmem:[#allocation8 + $0x98] sm:$0xff]  ;;  %v317_v32 = vld [vmem:[#allocation8 + $0x8] sm:$0xff] }
  0x47   :  { %157 = vmatpush1.msra.mxu0 %v68_v48  ;;  %234 = vmatpush1.msra.mxu1 %v70_v1  ;;  %v319_v28 = vld [vmem:[#allocation8 + $0x18] sm:$0xff]  ;;  %v334_v29 = vld [vmem:[#allocation8 + $0x90] sm:$0xff]  ;;  %v332_v33 = vld [vmem:[#allocation8 + $0x80] sm:$0xff] }
  0x48   :  { %158 = vmatprep.subr.mxu0 %v65_v50  ;;  %235 = vmatprep.subr.mxu1 %v67_v2  ;;  %v318_v30 = vld [vmem:[#allocation8 + $0x10] sm:$0xff]  ;;  %v316_v34 = vld [vmem:[#allocation8] sm:$0xff] }
  0x49   :  { %159 = vmatpush1.msra.mxu0 %v64_v52  ;;  %236 = vmatpush1.msra.mxu1 %v66_v3 }
  0x4a   :  { %193 = vmatmul.mubr.f32.vlgmr.msra.gmra.mxu0 %v62_v54  ;;  %270 = vmatmul.mubr.f32.vlgmr.msra.gmra.mxu1 %v62_v54 }
  0x4b   :  { %198 = vmatprep.mubr.f32.mxu0 %v644_v0  ;;  %275 = vmatprep.mubr.f32.mxu1 %v644_v0  ;;  %v328_v0 = vld [vmem:[#allocation8 + $0x60] sm:$0xff] }
  0x4c   :  { %456 = vmatprep.subr.mxu0 %v347_v4  ;;  %494 = vmatprep.subr.mxu1 %v347_v4 }
  0x4d   :  { %457 = vmatpush3.msra.mxu0 %v331_v5  ;;  %510 = vmatpush3.msra.mxu1 %v331_v5 }
  0x4e   :  { %199 = vmatmul.mubr.f32.gmra.mxu0 %v63_v59  ;;  %276 = vmatmul.mubr.f32.gmra.mxu1 %v63_v59 }
  0x4f   :  { %458 = vmatprep.subr.mxu0 %v346_v6  ;;  %495 = vmatprep.subr.mxu1 %v346_v6 }
  0x50   :  { %459 = vmatpush3.msra.mxu0 %v330_v7  ;;  %511 = vmatpush3.msra.mxu1 %v330_v7 }
  0x51   :  { %460 = vmatprep.subr.mxu0 %v345_v8  ;;  %496 = vmatprep.subr.mxu1 %v345_v8 }
  0x52   :  { %461 = vmatpush3.msra.mxu0 %v329_v9  ;;  %512 = vmatpush3.msra.mxu1 %v329_v9 }
  0x53   :  { %462 = vmatprep.subr.mxu0 %v344_v10  ;;  %497 = vmatprep.subr.mxu1 %v344_v10 }
  0x54   :  { %463 = vmatpush3.msra.mxu0 %v328_v0  ;;  %513 = vmatpush3.msra.mxu1 %v328_v0 }
  0x55   :  { %464 = vmatprep.subr.mxu0 %v343_v11  ;;  %498 = vmatprep.subr.mxu1 %v343_v11 }
  0x56   :  { %465 = vmatpush3.msra.mxu0 %v327_v12  ;;  %514 = vmatpush3.msra.mxu1 %v327_v12 }
  0x57   :  { %466 = vmatprep.subr.mxu0 %v342_v13  ;;  %499 = vmatprep.subr.mxu1 %v342_v13 }
  0x58   :  { %467 = vmatpush3.msra.mxu0 %v326_v14  ;;  %515 = vmatpush3.msra.mxu1 %v326_v14 }
  0x59   :  { %468 = vmatprep.subr.mxu0 %v341_v15  ;;  %500 = vmatprep.subr.mxu1 %v341_v15 }
  0x5a   :  { %469 = vmatpush3.msra.mxu0 %v325_v16  ;;  %516 = vmatpush3.msra.mxu1 %v325_v16 }
  0x5b   :  { %470 = vmatprep.subr.mxu0 %v340_v17  ;;  %501 = vmatprep.subr.mxu1 %v340_v17 }
  0x5c   :  { %471 = vmatpush3.msra.mxu0 %v324_v18  ;;  %517 = vmatpush3.msra.mxu1 %v324_v18 }
  0x5d   :  { %472 = vmatprep.subr.mxu0 %v339_v19  ;;  %502 = vmatprep.subr.mxu1 %v339_v19 }
  0x5e   :  { %473 = vmatpush3.msra.mxu0 %v323_v20  ;;  %518 = vmatpush3.msra.mxu1 %v323_v20 }
  0x5f   :  { %474 = vmatprep.subr.mxu0 %v338_v21  ;;  %503 = vmatprep.subr.mxu1 %v338_v21 }
  0x60   :  { %475 = vmatpush3.msra.mxu0 %v322_v22  ;;  %519 = vmatpush3.msra.mxu1 %v322_v22 }
  0x61   :  { %476 = vmatprep.subr.mxu0 %v337_v23  ;;  %504 = vmatprep.subr.mxu1 %v337_v23 }
  0x62   :  { %477 = vmatpush3.msra.mxu0 %v321_v24  ;;  %520 = vmatpush3.msra.mxu1 %v321_v24 }
  0x63   :  { %478 = vmatprep.subr.mxu0 %v336_v25  ;;  %505 = vmatprep.subr.mxu1 %v336_v25 }
  0x64   :  { %479 = vmatpush3.msra.mxu0 %v320_v26  ;;  %521 = vmatpush3.msra.mxu1 %v320_v26 }
  0x65   :  { %480 = vmatprep.subr.mxu0 %v335_v27  ;;  %506 = vmatprep.subr.mxu1 %v335_v27 }
  0x66   :  { %481 = vmatpush3.msra.mxu0 %v319_v28  ;;  %522 = vmatpush3.msra.mxu1 %v319_v28 }
  0x67   :  { %482 = vmatprep.subr.mxu0 %v334_v29  ;;  %507 = vmatprep.subr.mxu1 %v334_v29 }
  0x68   :  { %483 = vmatpush3.msra.mxu0 %v318_v30  ;;  %523 = vmatpush3.msra.mxu1 %v318_v30 }
  0x69   :  { %484 = vmatprep.subr.mxu0 %v333_v31  ;;  %508 = vmatprep.subr.mxu1 %v333_v31 }
  0x6a   :  { %485 = vmatpush3.msra.mxu0 %v317_v32  ;;  %524 = vmatpush3.msra.mxu1 %v317_v32 }
  0x6b   :  { %486 = vmatprep.subr.mxu0 %v332_v33  ;;  %509 = vmatprep.subr.mxu1 %v332_v33 }
  0x6c   :  { %487 = vmatpush3.msra.mxu0 %v316_v34  ;;  %525 = vmatpush3.msra.mxu1 %v316_v34 }
 0x10a   :  { %v194_v35 = vpop.f32.mrf.mxu0  ;;  %v271_v51 = vpop.f32.mrf.mxu1 }
 0x10b   :  { %v452_v36 = vmul.f32 -1.442695, %v194_v35 }
 0x10c   :  { %v196_v37 = vpop.f32.mrf.mxu0  ;;  %v273_v53 = vpop.f32.mrf.mxu1 }
 0x10d   :  { %535 = vpow2.f32 %v452_v36  ;;  %v453_v38 = vmul.f32 -1.442695, %v196_v37 }
 0x10e   :  { %v200_v39 = vpop.f32.mrf.mxu0  ;;  %v277_v58 = vpop.f32.mrf.mxu1 }
 0x10f   :  { %537 = vpow2.f32 %v453_v38  ;;  %v454_v40 = vmul.f32 -1.442695, %v200_v39 }
 0x110   :  { %v202_v41 = vpop.f32.mrf.mxu0  ;;  %v279_v1 = vpop.f32.mrf.mxu1 }
 0x111   :  { %539 = vpow2.f32 %v454_v40  ;;  %v455_v42 = vmul.f32 -1.442695, %v202_v41 }
 0x113   :  { %541 = vpow2.f32 %v455_v42 }
 0x11a   :  { %v536_v43 = vpop.eup %535 }
 0x11b   :  { %v294_v44 = vadd.f32 1.0, %v536_v43 }
 0x11c   :  { %v538_v45 = vpop.eup %537 }
 0x11d   :  { %543 = vrcp.f32 %v294_v44  ;;  %v295_v46 = vadd.f32 1.0, %v538_v45 }
 0x11e   :  { %v540_v47 = vpop.eup %539 }
 0x11f   :  { %545 = vrcp.f32 %v295_v46  ;;  %v296_v48 = vadd.f32 1.0, %v540_v47 }
 0x120   :  { %v542_v49 = vpop.eup %541 }
 0x121   :  { %547 = vrcp.f32 %v296_v48  ;;  %v297_v50 = vadd.f32 1.0, %v542_v49 }
 0x123   :  { %549 = vrcp.f32 %v297_v50 }
 0x12a   :  { %v544_v52 = vpop.eup %543 }
 0x12b   :  { %v306_v55 = vmul.f32 %v544_v52, %v194_v35 }
 0x12c   :  { %v546_v54 = vpop.eup %545 }
 0x12d   :  { %v307_v56 = vmul.f32 %v546_v54, %v196_v37  ;;  %v310_v62 = vmul.f32 %v306_v55, %v271_v51 }
 0x12e   :  { %v548_v57 = vpop.eup %547 }
 0x12f   :  { %v311_v59 = vmul.f32 %v307_v56, %v273_v53  ;;  %v308_v61 = vmul.f32 %v548_v57, %v200_v39 }
 0x130   :  { %v550_v60 = vpop.eup %549 }
 0x131   :  { %v309_v63 = vmul.f32 %v550_v60, %v202_v41  ;;  %412 = vmatprep.mubr.f32.mxu0 %v311_v59  ;;  %v312_v3 = vmul.f32 %v308_v61, %v277_v58 }
 0x132   :  { %413 = vmatmul.mubr.f32.vlgmr.msra.gmra.mxu0 %v310_v62 }
 0x133   :  { %v313_v2 = vmul.f32 %v309_v63, %v279_v1 }
 0x135   :  { %417 = vmatprep.mubr.f32.mxu1 %v313_v2 }
 0x136   :  { %418 = vmatmul.mubr.f32.vlgmr.msra.gmra.mxu1 %v312_v3 }
 0x1f2   :  { %v488_v4 = vpop.f32.mrf.mxu0 }
 0x1f4   :  { %v489_v5 = vpop.f32.mrf.mxu0 }
 0x1f5   :  { %v490_v6 = vadd.f32 %v489_v5, %v488_v4 }
 0x1f6   :  { %v491_v7 = vpop.f32.mrf.mxu1 }
 0x1f7   :  { %432 = vst [vmem:[#allocation9] sm:$0xff] %v490_v6 }
 0x1f8   :  { %v492_v8 = vpop.f32.mrf.mxu1 }
 0x1f9   :  { %v493_v9 = vadd.f32 %v492_v8, %v491_v7 }
 0x1fb   :  { %433 = vst [vmem:[#allocation9 + $0x8] sm:$0xff] %v493_v9 }
 0x1fc   :  { %622 = shalt.err (!%p619_p5)
}
 0x1fd   :  { %445 = dma.vmem_to_hbm [thread:$0]  %s440_s2, 256, %s694_s3, [#allocation5], %s641_s22, %s641_s22, %s642_s23  }
 0x1fe   :  { %635 = dma.done.wait [#allocation5], 256  }
 0x1ff   :  { %636 = vsyncadd [#allocation5], 4294967040 }
 0x200   :  { %449 = vsyncpa [#allocation4], 1 }
 0x201   :  { %450 = vsyncpa [#allocation7], 1 }
 0x202   :  { %451 = vsyncpa [#allocation5], 1 }

</bundles_post_ra>
